<compile_context>
chip_gen: v6e
topology: v6e:2x2x1
jax: 0.10.0
libtpu: 0.0.40
codegen_flags: <defaults>
</compile_context>

<pallas_src>
import jax
import jax.numpy as jnp
from jax.experimental import pallas as pl
from jax.experimental.pallas import tpu as pltpu


def _round_up(x, m):
    return ((x + m - 1) // m) * m


def linear_kernel(x_ref, w_ref, b_ref, o_ref, acc_ref):
    # x_ref: (tm, tk) bf16, w_ref: (tk, tn) bf16, b_ref: (1, tn) f32
    # acc_ref: (tm, tn) f32 scratch, o_ref: (tm, tn) f32
    k = pl.program_id(2)

    @pl.when(k == 0)
    def _():
        # Initialize accumulator with broadcast bias -> bias add is free.
        acc_ref[...] = jnp.broadcast_to(b_ref[...], acc_ref.shape)

    acc_ref[...] += jnp.dot(
        x_ref[...], w_ref[...], preferred_element_type=jnp.float32
    )

    @pl.when(k == pl.num_programs(2) - 1)
    def _():
        o_ref[...] = acc_ref[...].astype(o_ref.dtype)


def darts_best_forward(x_nchw, weight, bias):
    """x_nchw: (B, C, H, W) f32. weight: (F, H_out) f32. bias: (H_out,) f32."""
    b = x_nchw.shape[0]
    x_flat = x_nchw.reshape(b, -1)                 # nn.Flatten()
    f = x_flat.shape[1]
    h_out = weight.shape[1]

    # Tile sizes: 256-aligned preferred (v6e/v7x MXU is 2x256x256) when the
    # problem is big enough; fall back to the smallest legal aligned tile so
    # toy shapes stay cheap. Lane dims are multiples of 128, sublane of 8.
    tm = min(256, _round_up(b, 8))
    tn = min(256, _round_up(h_out, 128))
    tk = min(512, _round_up(f, 128))

    m_pad = _round_up(b, tm)
    n_pad = _round_up(h_out, tn)
    k_pad = _round_up(f, tk)

    # Zero-pad (zeros are exact for matmul) and cast matmul operands to bf16;
    # accumulation and bias stay f32.
    x_p = jnp.pad(x_flat, ((0, m_pad - b), (0, k_pad - f))).astype(jnp.bfloat16)
    w_p = jnp.pad(weight, ((0, k_pad - f), (0, n_pad - h_out))).astype(jnp.bfloat16)
    b_p = jnp.pad(bias, (0, n_pad - h_out)).reshape(1, n_pad).astype(jnp.float32)

    grid = (m_pad // tm, n_pad // tn, k_pad // tk)

    out_padded = pl.pallas_call(
        linear_kernel,
        out_shape=jax.ShapeDtypeStruct((m_pad, n_pad), jnp.float32),
        grid_spec=pltpu.PrefetchScalarGridSpec(
            num_scalar_prefetch=0,
            grid=grid,
            in_specs=[
                pl.BlockSpec((tm, tk), lambda i, j, k: (i, k)),
                pl.BlockSpec((tk, tn), lambda i, j, k: (k, j)),
                pl.BlockSpec((1, tn), lambda i, j, k: (0, j)),
            ],
            out_specs=pl.BlockSpec((tm, tn), lambda i, j, k: (i, j)),
            scratch_shapes=[pltpu.VMEM((tm, tn), jnp.float32)],
        ),
        compiler_params=pltpu.CompilerParams(
            dimension_semantics=("parallel", "parallel", "arbitrary"),
            # Safe on every generation (v7x scoped default is 32 MiB of 64 MiB
            # physical); far above what these tiles need.
            vmem_limit_bytes=32 * 1024 * 1024,
        ),
    )(x_p, w_p, b_p)

    return out_padded[:b, :h_out]


if __name__ == "__main__":
    # Small shapes consistent with the module: NCHW input, one Linear op.
    B, C, H, W = 2, 4, 16, 16
    F_in = C * H * W            # 1024 flattened features
    H_out = 32                  # hidden width of the selected op

    key = jax.random.PRNGKey(0)
    kx, kw, kb = jax.random.split(key, 3)

    x = jax.random.normal(kx, (B, C, H, W), dtype=jnp.float32)
    limit = 1.0 / (F_in ** 0.5)
    weight = jax.random.uniform(kw, (F_in, H_out), jnp.float32, -limit, limit)
    bias = jax.random.uniform(kb, (H_out,), jnp.float32, -limit, limit)

    out = darts_best_forward(x, weight, bias)
    out = jax.block_until_ready(out)

    # Reference with the same bf16 operand rounding (matmul in f32).
    x_bf = x.reshape(B, -1).astype(jnp.bfloat16).astype(jnp.float32)
    w_bf = weight.astype(jnp.bfloat16).astype(jnp.float32)
    ref = x_bf @ w_bf + bias
    ref_f32 = x.reshape(B, -1) @ weight + bias

    assert out.shape == (B, H_out)
    assert jnp.allclose(out, ref, atol=1e-2, rtol=1e-2)
    assert jnp.allclose(out, ref_f32, atol=5e-2, rtol=5e-2)

    print("KERNEL_OK")
</pallas_src>

<mosaic_0001>
module attributes {stable_mosaic.version = 11 : i64} {
  func.func @linear_kernel(%arg0: i32, %arg1: i32, %arg2: i32, %arg3: memref<8x512xbf16, #tpu.memory_space<vmem>>, %arg4: memref<512x128xbf16, #tpu.memory_space<vmem>>, %arg5: memref<1x128xf32, #tpu.memory_space<vmem>>, %arg6: memref<8x128xf32, #tpu.memory_space<vmem>>, %arg7: memref<8x128xf32, #tpu.memory_space<vmem>>) attributes {dimension_semantics = [#tpu.dimension_semantics<parallel>, #tpu.dimension_semantics<parallel>, #tpu.dimension_semantics<arbitrary>], iteration_bounds = array<i64: 1, 1, 2>, scalar_prefetch = 0 : i64, scratch_operands = 1 : i64, tpu.core_type = #tpu.core_type<tc>, window_params = [{transform_indices = @transform_0, window_bounds = array<i64: 8, 512>}, {transform_indices = @transform_1, window_bounds = array<i64: 512, 128>}, {transform_indices = @transform_2, window_bounds = array<i64: 1, 128>}, {transform_indices = @transform_3, window_bounds = array<i64: 8, 128>}]} {
    %c0_i32 = arith.constant 0 : i32
    %0 = arith.cmpi eq, %arg2, %c0_i32 : i32
    %1 = arith.extui %0 : i1 to i32
    %c0_i32_0 = arith.constant 0 : i32
    %2 = arith.cmpi ne, %1, %c0_i32_0 : i32
    scf.if %2 {
      %c0_9 = arith.constant 0 : index
      %c0_10 = arith.constant 0 : index
      %12 = vector.load %arg5[%c0_9, %c0_10] : memref<1x128xf32, #tpu.memory_space<vmem>>, vector<1x128xf32>
      %13 = vector.shape_cast %12 : vector<1x128xf32> to vector<1x128xf32>
      %14 = vector.broadcast %13 : vector<1x128xf32> to vector<8x128xf32>
      %c0_11 = arith.constant 0 : index
      %c0_12 = arith.constant 0 : index
      %15 = vector.load %arg7[%c0_11, %c0_12] : memref<8x128xf32, #tpu.memory_space<vmem>>, vector<8x128xf32>
      tpu.vector_store %arg7[%c0_11, %c0_12], %14 {strides = array<i32>} : memref<8x128xf32, #tpu.memory_space<vmem>>, vector<8x128xf32>,
    } else {
    }
    %c0 = arith.constant 0 : index
    %c0_1 = arith.constant 0 : index
    %3 = vector.load %arg7[%c0, %c0_1] : memref<8x128xf32, #tpu.memory_space<vmem>>, vector<8x128xf32>
    %c0_2 = arith.constant 0 : index
    %c0_3 = arith.constant 0 : index
    %4 = vector.load %arg3[%c0_2, %c0_3] : memref<8x512xbf16, #tpu.memory_space<vmem>>, vector<8x512xbf16>
    %c0_4 = arith.constant 0 : index
    %c0_5 = arith.constant 0 : index
    %5 = vector.load %arg4[%c0_4, %c0_5] : memref<512x128xbf16, #tpu.memory_space<vmem>>, vector<512x128xbf16>
    %cst = arith.constant dense<0.000000e+00> : vector<8x128xf32>
    %6 = tpu.matmul %4, %5, %cst {dimension_numbers = #tpu.dot_dimension_numbers<[1], [0], [0], [1], [0, 0, 1, 1], [], []>} : vector<8x512xbf16>, vector<512x128xbf16>, vector<8x128xf32> -> vector<8x128xf32>
    %7 = arith.addf %3, %6 : vector<8x128xf32>
    %c0_6 = arith.constant 0 : index
    %c0_7 = arith.constant 0 : index
    %8 = vector.load %arg7[%c0_6, %c0_7] : memref<8x128xf32, #tpu.memory_space<vmem>>, vector<8x128xf32>
    tpu.vector_store %arg7[%c0_6, %c0_7], %7 {strides = array<i32>} : memref<8x128xf32, #tpu.memory_space<vmem>>, vector<8x128xf32>,
    %c1_i32 = arith.constant 1 : i32
    %9 = arith.cmpi eq, %arg2, %c1_i32 : i32
    %10 = arith.extui %9 : i1 to i32
    %c0_i32_8 = arith.constant 0 : i32
    %11 = arith.cmpi ne, %10, %c0_i32_8 : i32
    scf.if %11 {
      %c0_9 = arith.constant 0 : index
      %c0_10 = arith.constant 0 : index
      %12 = vector.load %arg7[%c0_9, %c0_10] : memref<8x128xf32, #tpu.memory_space<vmem>>, vector<8x128xf32>
      %c0_11 = arith.constant 0 : index
      %c0_12 = arith.constant 0 : index
      %13 = vector.load %arg6[%c0_11, %c0_12] : memref<8x128xf32, #tpu.memory_space<vmem>>, vector<8x128xf32>
      tpu.vector_store %arg6[%c0_11, %c0_12], %12 {strides = array<i32>} : memref<8x128xf32, #tpu.memory_space<vmem>>, vector<8x128xf32>,
    } else {
    }
    return
  }
  func.func @transform_0(%arg0: i32, %arg1: i32, %arg2: i32) -> (i32, i32) {
    %c0_i32 = arith.constant 0 : i32
    return %arg0, %arg2 : i32, i32
  }
  func.func @transform_1(%arg0: i32, %arg1: i32, %arg2: i32) -> (i32, i32) {
    %c0_i32 = arith.constant 0 : i32
    return %arg2, %arg1 : i32, i32
  }
  func.func @transform_2(%arg0: i32, %arg1: i32, %arg2: i32) -> (i32, i32) {
    %c0_i32 = arith.constant 0 : i32
    %c0_i32_0 = arith.constant 0 : i32
    return %c0_i32, %arg1 : i32, i32
  }
  func.func @transform_3(%arg0: i32, %arg1: i32, %arg2: i32) -> (i32, i32) {
    %c0_i32 = arith.constant 0 : i32
    return %arg0, %arg1 : i32, i32
  }
}

</mosaic_0001>

<bundles_post_ra>
// kernel: tpu_custom_call.1
= control target key start
LH: loop header
LB: loop body
LE: loop exit
PB: predicated region body
PF: predicated region fallthrough
CT: control target
= control target key end

     0   :  { %8 = vsyncpa [#allocation4], 0  ;;  %s1310_s0 = inlined_call_operand.hbm [shape: bf16[8,1024], index: 0, kind: input, shape index: {}]   ;;  %s1311_s1 = inlined_call_operand.hbm [shape: bf16[1024,128], index: 1, kind: input, shape index: {}]   ;;  %s1312_s2 = inlined_call_operand.vmem [shape: f32[1,128], index: 2, kind: input, shape index: {}]   ;;  %s1313_s3 = inlined_call_operand.hbm [shape: f32[8,128], index: 3, kind: output, shape index: {}]  }
   0x1   :  { %10 = vsyncpa [#allocation4 + $0x1], 0 }
   0x2   :  { %11 = vsyncpa [#allocation7], 0 }
   0x3   :  { %13 = vsyncpa [#allocation7 + $0x1], 0 }
   0x4   :  { %14 = vsyncpa [#allocation5], 0  ;;  %s1125_s12 = smov 0   ;;  %s1127_s13 = smov 0  }
   0x5   :  { %s1129_s14 = smov 0   ;;  %s1131_s15 = smov 0  }
   0x6   :  { %s1133_s16 = smov 0   ;;  %s1135_s17 = smov 0  }
   0x7 LB: > { %s753_s18 = sadd.s32 4294967295, %s1098_s17   ;;  %s32_s19 = sadd.s32 1, %s1094_s16  ;;  %s1098_s17 = sphi %s1135_s17, %s20_s17   ;;  %s1094_s16 = sphi %s1133_s16, %s1323_s16   ;;  %s1090_s15 = sphi %s1131_s15, %s1322_s15   ;;  %s1086_s14 = sphi %s1129_s14, %s1321_s14   ;;  %s1082_s13 = sphi %s1127_s13, %s1320_s13   ;;  %s1078_s12 = sphi %s1125_s12, %s1319_s12  }
   0x8   : > { %p33_p0 = scmp.ge.s32.totalorder %s32_s19, 2  ;;  %s48_s20 = sadd.s32 1, %s1086_s14 }
   0x9   : > { %p55_p1 = scmp.ne.s32.totalorder %s1086_s14, %s1082_s13  ;;  %p56_p2 = scmp.eq.s32.totalorder %s1098_s17, 0 }
   0xa   : > { %s1325_s19 = smov (%p33_p0, %s32_s19), 0  ;;  %p61_p4 = scmp.ne.s32.totalorder %s1082_s13, %s1078_s12 }
   0xb   : > { %p1161_p3 = por %p56_p2, %p55_p1  ;;  %s44_s22 = ssub.s32 %s1094_s16, %s1325_s19 }
   0xc   : > { %p62_p5 = scmp.eq.s32.totalorder %s753_s18, 0  ;;  %p46_p6 = scmp.eq.s32.totalorder %s44_s22, 0 }
   0xd   : > { %p870_p8 = scmp.lt.s32.totalorder %s1098_s17, 2  ;;  %s1179_s25 = sand.u32 1, %s1086_s14  }
   0xe   : > { %p1170_p7 = por %p62_p5, %p61_p4  ;;  %s809_s26 = sshll.u32 %s1094_s16, 8 }
   0xf   : > { %s1176_s24 = scalar_select %p46_p6, %s1086_s14, %s48_s20  }
  0x10   : > { %s757_s27 = sshll.u32 %s1179_s25, 4  ;;  %s185_s30 = scalar_lea.hbm %s1310_s0, %s809_s26 }
  0x11   : > { %s177_s4 = scalar_lea.vmem [#allocation3], %s757_s27  ;;  %p1188_p9 = pnand %p870_p8, %p1161_p3 }
  0x12   : > { %s187_s5 = sshll.u32 %s177_s4, 4  ;;  %p763_p10 = scmp.ge.s32.totalorder %s1098_s17, 1  ;;  %s188_s5 = int_to_ptr.vmem [resolvable:$true] %s187_s5 }
  0x13   : > { %p214_p11 = scmp.lt.s32.totalorder %s1098_s17, 3  ;;  %s174_s7 = scalar_lea.sflag [#allocation4], %s1179_s25 }
  0x14   : > { %p962_p12 = pneg %p1188_p9  ;;  %s973_s8 = scalar_lea.vmem %s188_s5, 256 }
  0x15   : > { %p974_p13 = scmp.ne.s32.totalorder %s188_s5, %s973_s8  ;;  %s1100_s9 = smov [#allocation3]  }
  0x16   : > { %s978_s10 = sshll.u32 %s1100_s9, 4  ;;  %s979_s10 = int_to_ptr.vmem [resolvable:$false] %s978_s10 }
  0x17   : > { %p976_p0 = pnand %p974_p13, %p962_p12  ;;  %s980_s11 = scalar_lea.vmem %s979_s10, 512 }
  0x18   : > { %p981_p2 = scmp.lt.s32.totalorder %s188_s5, %s979_s10  ;;  %p982_p3 = scmp.lt.s32.totalorder %s980_s11, %s973_s8 }
  0x19   : > { %p977_p1 = pneg %p976_p0 }
  0x1a   : > { %p983_p4 = por %p982_p3, %p981_p2 }
  0x1c   : > { %p984_p5 = pnand %p983_p4, %p977_p1 }
  0x1e   : > { %987 = shalt.err (!%p984_p5)
}
  0x1f   : > { %866 = dma.hbm_to_vmem [thread:$0]  (!%p1188_p9), %s185_s30, 256, %s188_s5, %s174_s7  }
  0x20   : > { %p1206_p6 = pnand %p763_p10, %p214_p11  ;;  %s760_s20 = sshll.u32 %s1179_s25, 8 }
  0x21   : > { %s810_s21 = sshll.u32 %s1094_s16, 12  ;;  %s198_s28 = scalar_lea.vmem [#allocation6], %s760_s20 }
  0x22   : > { %s205_s27 = scalar_lea.hbm %s1311_s1, %s810_s21  ;;  %s206_s29 = sshll.u32 %s198_s28, 4  ;;  %s207_s29 = int_to_ptr.vmem [resolvable:$true] %s206_s29 }
  0x23   : > { %s195_s4 = scalar_lea.sflag [#allocation7], %s1179_s25  ;;  %s1001_s8 = scalar_lea.vmem %s207_s29, 4096 }
  0x24   : > { %p1002_p8 = scmp.ne.s32.totalorder %s207_s29, %s1001_s8  ;;  %s1101_s30 = smov [#allocation6]  }
  0x25   : > { %s1006_s5 = sshll.u32 %s1101_s30, 4  ;;  %s1007_s5 = int_to_ptr.vmem [resolvable:$false] %s1006_s5 }
  0x26   : > { %p1004_p13 = pnand %p1002_p8, %p962_p12  ;;  %s1008_s7 = scalar_lea.vmem %s1007_s5, 8192 }
  0x27   : > { %p1009_p10 = scmp.lt.s32.totalorder %s207_s29, %s1007_s5  ;;  %p1010_p11 = scmp.lt.s32.totalorder %s1008_s7, %s1001_s8 }
  0x28   : > { %p1005_p0 = pneg %p1004_p13 }
  0x29   : > { %p1011_p1 = por %p1010_p11, %p1009_p10 }
  0x2b   : > { %p1012_p2 = pnand %p1011_p1, %p1005_p0 }
  0x2d   : > { %1015 = shalt.err (!%p1012_p2)
}
  0x2e   : > { %s1102_s9 = smov 64   ;;  %s1103_s10 = smov 4  }
  0x2f   : > { %869 = dma.hbm_to_vmem [thread:$0]  (!%p1188_p9), %s205_s27, 4096, %s207_s29, %s195_s4, %s1102_s9, %s1102_s9, %s1103_s10  }
  0x30   : > { %218 = sbr.rel (%p1206_p6) target bundleno = 326 (0x146), region = 32  ;;  %s220_s25 = sand.u32 (!%p1206_p6), 1, %s1082_s13  }
  0x31   : > { %s764_s11 = sshll.u32 (!%p1206_p6), %s220_s25, 4  ;;  %s221_s20 = scalar_lea.sflag (!%p1206_p6), [#allocation4], %s220_s25 }
  0x32   : > { %s1224_s21 = scalar_lea.vmem (!%p1206_p6), [#allocation3], %s764_s11 }
  0x35   : > { %1065 = dma.done.wait (%p1170_p7), %s221_s20, 256  }
  0x36   : > { %1067 = vsyncadd (%p1170_p7), %s221_s20, 4294967040  ;;  %s765_s22 = sshll.u32 %s220_s25, 8  ;;  %s230_s26 = scalar_lea.sflag [#allocation7], %s220_s25 }
  0x37   : > { %s1230_s6 = scalar_lea.vmem [#allocation6], %s765_s22 }
  0x38   : > { %1069 = dma.done.wait (%p1170_p7), %s230_s26, 4096  }
  0x39   : > { %1071 = vsyncadd (%p1170_p7), %s230_s26, 4294963200  ;;  %p766_p9 = scmp.ne.s32.totalorder %s1090_s15, 0 }
  0x3b   : > { %268 = sbr.rel (%p766_p9) target bundleno = 66 (0x42), region = 44 }
  0x40   : > { %v767_v0 = vld [vmem:[%s1312_s2] ss:$0 sm:$0xff] }
  0x41   : > { %276 = vst [vmem:[#allocation2] sm:$0xff] %v767_v0 }
  0x42 PF: > { %v924_v1 = vld [vmem:[%s1230_s6 + $0x78] sm:$0xff]   ;;  %v928_v5 = vld [vmem:[%s1230_s6 + $0x70] sm:$0xff]   ;;  %v932_v9 = vld [vmem:[%s1230_s6 + $0x68] sm:$0xff]   ;;  %p804_p7 = scmp.ne.s32.totalorder %s1090_s15, 1 }
  0x43   : > { %v925_v2 = vld [vmem:[%s1230_s6 + $0xf8] sm:$0xff]   ;;  %811 = vmatprep.subr.bf16.mxu0 %v924_v1  ;;  %v929_v6 = vld [vmem:[%s1230_s6 + $0xf0] sm:$0xff]   ;;  %v933_v10 = vld [vmem:[%s1230_s6 + $0xe8] sm:$0xff]  }
  0x44   : > { %v926_v3 = vld [vmem:[%s1230_s6 + $0x38] sm:$0xff]   ;;  %833 = vmatprep.subr.bf16.mxu1 %v925_v2  ;;  %v930_v7 = vld [vmem:[%s1230_s6 + $0x30] sm:$0xff]   ;;  %v934_v11 = vld [vmem:[%s1230_s6 + $0x28] sm:$0xff]  }
  0x45   : > { %v927_v4 = vld [vmem:[%s1230_s6 + $0xb8] sm:$0xff]   ;;  %812 = vmatpush3.bf16.msra.mxu0 %v926_v3  ;;  %v931_v8 = vld [vmem:[%s1230_s6 + $0xb0] sm:$0xff]   ;;  %v935_v12 = vld [vmem:[%s1230_s6 + $0xa8] sm:$0xff]  }
  0x46   : > { %834 = vmatpush3.bf16.msra.mxu1 %v927_v4  ;;  %813 = vmatprep.subr.bf16.mxu0 %v928_v5  ;;  %v936_v13 = vld [vmem:[%s1230_s6 + $0x60] sm:$0xff]   ;;  %v940_v17 = vld [vmem:[%s1230_s6 + $0x58] sm:$0xff]   ;;  %v944_v21 = vld [vmem:[%s1230_s6 + $0x50] sm:$0xff]  }
  0x47   : > { %835 = vmatprep.subr.bf16.mxu1 %v929_v6  ;;  %v937_v14 = vld [vmem:[%s1230_s6 + $0xe0] sm:$0xff]   ;;  %v941_v18 = vld [vmem:[%s1230_s6 + $0xd8] sm:$0xff]   ;;  %v945_v22 = vld [vmem:[%s1230_s6 + $0xd0] sm:$0xff]  }
  0x48   : > { %v938_v15 = vld [vmem:[%s1230_s6 + $0x20] sm:$0xff]   ;;  %v942_v19 = vld [vmem:[%s1230_s6 + $0x18] sm:$0xff]   ;;  %v946_v23 = vld [vmem:[%s1230_s6 + $0x10] sm:$0xff]  }
  0x49   : > { %814 = vmatpush3.bf16.msra.mxu0 %v930_v7  ;;  %v939_v16 = vld [vmem:[%s1230_s6 + $0xa0] sm:$0xff]   ;;  %v943_v20 = vld [vmem:[%s1230_s6 + $0x98] sm:$0xff]   ;;  %v947_v24 = vld [vmem:[%s1230_s6 + $0x90] sm:$0xff]  }
  0x4a   : > { %836 = vmatpush3.bf16.msra.mxu1 %v931_v8  ;;  %815 = vmatprep.subr.bf16.mxu0 %v932_v9  ;;  %v948_v25 = vld [vmem:[%s1230_s6 + $0x48] sm:$0xff]   ;;  %v952_v29 = vld [vmem:[%s1230_s6 + $0x40] sm:$0xff]   ;;  %v277_v45 = vld [vmem:[#allocation2] sm:$0xff] }
  0x4b   : > { %837 = vmatprep.subr.bf16.mxu1 %v933_v10  ;;  %v949_v26 = vld [vmem:[%s1230_s6 + $0xc8] sm:$0xff]   ;;  %v953_v30 = vld [vmem:[%s1230_s6 + $0xc0] sm:$0xff]  }
  0x4c   : > { %v950_v27 = vld [vmem:[%s1230_s6 + $0x8] sm:$0xff]   ;;  %v954_v31 = vld [vmem:[%s1230_s6] sm:$0xff]  }
  0x4d   : > { %816 = vmatpush3.bf16.msra.mxu0 %v934_v11  ;;  %v951_v28 = vld [vmem:[%s1230_s6 + $0x88] sm:$0xff]   ;;  %v955_v32 = vld [vmem:[%s1230_s6 + $0x80] sm:$0xff]  }
  0x4e   : > { %838 = vmatpush3.bf16.msra.mxu1 %v935_v12  ;;  %817 = vmatprep.subr.bf16.mxu0 %v936_v13  ;;  %v278_v33 = vld [vmem:[%s1224_s21] sm:$0xff]  ;;  %v279_v34 = vld [vmem:[%s1224_s21 + $0x8] sm:$0xff] }
  0x4f   : > { %839 = vmatprep.subr.bf16.mxu1 %v937_v14  ;;  %v768_v35 = vcombine.low %v278_v33, %v278_v33  ;;  %v769_v36 = vcombine.high %v278_v33, %v278_v33  ;;  %v770_v37 = vcombine.low %v279_v34, %v279_v34  ;;  %v771_v38 = vcombine.high %v279_v34, %v279_v34 }
  0x51   : > { %818 = vmatpush3.bf16.msra.mxu0 %v938_v15  ;;  %582 = vmatprep.mubr.bf16.mxu0 %v769_v36 }
  0x52   : > { %840 = vmatpush3.bf16.msra.mxu1 %v939_v16  ;;  %819 = vmatprep.subr.bf16.mxu0 %v940_v17 }
  0x53   : > { %841 = vmatprep.subr.bf16.mxu1 %v941_v18  ;;  %622 = vmatprep.mubr.bf16.mxu1 %v771_v38 }
  0x55   : > { %820 = vmatpush3.bf16.msra.mxu0 %v942_v19 }
  0x56   : > { %842 = vmatpush3.bf16.msra.mxu1 %v943_v20  ;;  %821 = vmatprep.subr.bf16.mxu0 %v944_v21 }
  0x57   : > { %843 = vmatprep.subr.bf16.mxu1 %v945_v22 }
  0x59   : > { %822 = vmatpush3.bf16.msra.mxu0 %v946_v23 }
  0x5a   : > { %844 = vmatpush3.bf16.msra.mxu1 %v947_v24  ;;  %823 = vmatprep.subr.bf16.mxu0 %v948_v25 }
  0x5b   : > { %845 = vmatprep.subr.bf16.mxu1 %v949_v26 }
  0x5d   : > { %824 = vmatpush3.bf16.msra.mxu0 %v950_v27 }
  0x5e   : > { %846 = vmatpush3.bf16.msra.mxu1 %v951_v28  ;;  %825 = vmatprep.subr.bf16.mxu0 %v952_v29 }
  0x5f   : > { %847 = vmatprep.subr.bf16.mxu1 %v953_v30 }
  0x61   : > { %826 = vmatpush3.bf16.msra.mxu0 %v954_v31 }
  0x62   : > { %848 = vmatpush3.bf16.msra.mxu1 %v955_v32 }
  0x64   : > { %583 = vmatmul.mubr.bf16.vlgmr.msra.gmra.mxu0 %v768_v35 }
  0x65   : > { %623 = vmatmul.mubr.bf16.vlgmr.msra.gmra.mxu1 %v770_v37 }
 0x124   : > { %v827_v39 = vpop.f32.mrf.mxu0 }
 0x125   : > { %v849_v40 = vpop.f32.mrf.mxu1 }
 0x126   : > { %v828_v41 = vpop.f32.mrf.mxu0 }
 0x127   : > { %v850_v42 = vpop.f32.mrf.mxu1  ;;  %v829_v43 = vadd.f32 %v828_v41, %v827_v39 }
 0x128   : > { %v851_v44 = vadd.f32 %v850_v42, %v849_v40  ;;  %v830_v46 = vpop.f32.mrf.mxu0 }
 0x129   : > { %v852_v47 = vpop.f32.mrf.mxu1 }
 0x12a   : > { %v625_v48 = vadd.f32 %v851_v44, %v829_v43  ;;  %v831_v49 = vpop.f32.mrf.mxu0  ;;  %635 = sbr.rel (%p804_p7) target bundleno = 311 (0x137), region = 48 }
 0x12b   : > { %v853_v50 = vpop.f32.mrf.mxu1 }
 0x12c   : > { %v630_v51 = vadd.f32 %v625_v48, %v277_v45 }
 0x12e   : > { %631 = vst [vmem:[#allocation2] sm:$0xff] %v630_v51 }
 0x135   : > { %v636_v52 = vld [vmem:[#allocation2] sm:$0xff] }
 0x136   : > { %637 = vst [vmem:[#allocation8] sm:$0xff] %v636_v52 }
 0x137 PF: > { %p1277_p12 = scmp.eq.s32.totalorder %s753_s18, 1  ;;  %s1104_s28 = smov [#allocation8]  }
 0x138   : > { %s648_s29 = sshll.u32 %s1104_s28, 4  ;;  %s649_s29 = int_to_ptr.vmem [resolvable:$true] %s648_s29 }
 0x139   : > { %s1016_s4 = scalar_lea.vmem %s649_s29, 128  ;;  %p1023_p6 = scmp.lt.s32.totalorder %s649_s29, %s649_s29 }
 0x13a   : > { %p1017_p3 = scmp.ne.s32.totalorder %s649_s29, %s1016_s4  ;;  %p1024_p8 = scmp.lt.s32.totalorder %s1016_s4, %s1016_s4 }
 0x13c   : > { %p1018_p4 = pnand %p1017_p3, %p1277_p12  ;;  %p1025_p13 = por %p1024_p8, %p1023_p6 }
 0x13e   : > { %p1019_p5 = pneg %p1018_p4 }
 0x140   : > { %p1026_p0 = pnand %p1025_p13, %p1019_p5 }
 0x142   : > { %1029 = shalt.err (!%p1026_p0)
}
 0x143   : > { %860 = dma.vmem_to_hbm [thread:$0]  (%p1277_p12), %s649_s29, 128, %s1313_s3, [#allocation5]  }
 0x144   : > { %1073 = dma.done.wait (%p1277_p12), [#allocation5], 128  }
 0x145   : > { %1075 = vsyncadd (%p1277_p12), [#allocation5], 4294967168 }
 0x146 PF: > { %s20_s17 = sadd.s32 1, %s1098_s17   ;;  %s1319_s12 = smov %s1082_s13 }
 0x147   : > { %p17_p10 = scmp.ge.s32.totalorder %s20_s17, 4   ;;  %s1320_s13 = smov %s1086_s14 }
 0x148   : > { %s1321_s14 = smov %s1176_s24  ;;  %s1322_s15 = smov %s1094_s16 }
 0x149   : > { %s1323_s16 = smov %s1325_s19  ;;  %19 = sbr.rel (!%p17_p10) target bundleno = 7 (0x7), region = 94 }
 0x14e   :  { %661 = vsyncpa [#allocation4], 1 }
 0x14f   :  { %663 = vsyncpa [#allocation4 + $0x1], 1 }
 0x150   :  { %664 = vsyncpa [#allocation7], 1 }
 0x151   :  { %666 = vsyncpa [#allocation7 + $0x1], 1 }
 0x152   :  { %667 = vsyncpa [#allocation5], 1 }
 0x153   :  { %669 = vsyncpa [#allocation5 + $0x1], 1 }

</bundles_post_ra>
